<compile_context>
chip_gen: v7x
topology: tpu7x:2x2x1
jax: 0.10.0
libtpu: 0.0.40
codegen_flags: <defaults>
</compile_context>

<pallas_src>
import functools

import jax
import jax.numpy as jnp
from jax.experimental import pallas as pl
from jax.experimental.pallas import tpu as pltpu


# ---------------------------------------------------------------------------
# kernels
# ---------------------------------------------------------------------------

def _se_fused_kernel(x_ref, w1t_ref, b1_ref, w2_ref, b2_ref, o_ref, *, inv_s):
    # x_ref/o_ref: (C, S) native dtype; w1t_ref/w2_ref: (C, SE) f32;
    # b1_ref: (1, SE) f32; b2_ref: (C, 1) f32.
    x = x_ref[...]

    # global average pool over spatial dims: lane reduce, f32 accumulation
    mean = jnp.sum(x, axis=-1, keepdims=True, dtype=jnp.float32) * inv_s  # (C, 1)

    # conv1 (1x1x1): broadcast-multiply + sublane reduce -> (1, SE), SiLU
    h = jnp.sum(w1t_ref[...] * mean, axis=0, keepdims=True) + b1_ref[...]
    h = h * (1.0 / (1.0 + jnp.exp(-h)))

    # conv2 (1x1x1): broadcast-multiply + lane reduce -> (C, 1), Sigmoid
    s = jnp.sum(w2_ref[...] * h, axis=-1, keepdims=True) + b2_ref[...]
    s = 1.0 / (1.0 + jnp.exp(-s))

    # rescale: multiply in f32, cast once at the store; (C, 1) lane-broadcasts
    o_ref[...] = (x.astype(jnp.float32) * s).astype(o_ref.dtype)


def _se_sum_kernel(x_ref, sum_ref, *, s_total, tile_s, masked):
    # grid = (N, n_split, nS); x_ref: (C, tS); sum_ref: (C, 1) f32 output block
    # resident across the (arbitrary) S axis -> acts as the accumulator.
    si = pl.program_id(2)

    @pl.when(si == 0)
    def _():
        sum_ref[...] = jnp.zeros_like(sum_ref)

    x = x_ref[...]
    if masked:  # static: only when the S tile does not divide S exactly
        t = pl.program_id(1) * pl.num_programs(2) + si
        col = jax.lax.broadcasted_iota(jnp.int32, x.shape, 1) + t * tile_s
        x = jnp.where(col < s_total, x, jnp.zeros_like(x))

    sum_ref[...] += jnp.sum(x, axis=-1, keepdims=True, dtype=jnp.float32)


def _se_scale_kernel(x_ref, s_ref, o_ref):
    # x_ref/o_ref: (C, tS); s_ref: (C, 1) f32 -- multiply in f32, cast at store
    o_ref[...] = (x_ref[...].astype(jnp.float32) * s_ref[...]).astype(o_ref.dtype)


# ---------------------------------------------------------------------------
# wrapper helpers
# ---------------------------------------------------------------------------

def _vmem_capacity_bytes():
    """Per-core VMEM capacity; conservative 64 MiB (v7x) if the query fails."""
    try:
        cap = getattr(pltpu.get_tpu_info(), "vmem_capacity_bytes", None)
        if cap:
            return int(cap)
    except Exception:
        pass
    return 64 << 20


def _pick_tile_s(S, C, itemsize, budget_bytes, buf_factor, max_tile_s=None):
    """Pick an S tile: lane-dense multiple of 128, as large as the budget allows.

    Prefers tiles that divide S exactly; otherwise returns a non-dividing tile
    (the reduce kernel masks the partial tail; the scale kernel relies on
    Pallas dropping out-of-bounds writes of the last block)."""
    per_col = max(1, buf_factor * C * itemsize)
    cap = (budget_bytes // per_col) // 128 * 128
    if max_tile_s is not None:
        cap = min(cap, (max_tile_s // 128) * 128)
    cap = max(cap, 128)
    if S <= cap:
        return S                       # whole extent in a single tile
    t = cap
    while t >= 128:                    # largest multiple-of-128 divisor of S
        if S % t == 0:
            return t
        t -= 128
    return cap                         # no divisor: masked partial last tile


# ---------------------------------------------------------------------------
# wrapper
# ---------------------------------------------------------------------------

def squeeze_excite(x, w1, b1, w2, b2, *, force_two_pass=False, max_tile_s=None,
                   donate_input=False):
    """SqueezeExcite forward.

    x: (N, C, D, H, W); w1: (SE, C) (conv1 weight squeezed); b1: (SE,);
    w2: (C, SE); b2: (C,).  Returns sigmoid(conv2(silu(conv1(mean(x))))) * x.
    """
    N, C, D, H, W = x.shape
    S = D * H * W
    SE = w1.shape[0]
    itemsize = jnp.dtype(x.dtype).itemsize

    # free layout change (contiguous reshape): channels on sublanes, S on lanes
    xt = x.reshape(N, C, S)

    w1t = jnp.transpose(w1).astype(jnp.float32)   # (C, SE)  -- tiny
    w2f = w2.astype(jnp.float32)                  # (C, SE)  -- already native
    b1r = b1.reshape(1, SE).astype(jnp.float32)
    b2r = b2.reshape(C, 1).astype(jnp.float32)

    vmem_cap = _vmem_capacity_bytes()
    fused_budget = int(vmem_cap * 0.80)           # ~102 MiB v5e/v6e, ~51 MiB v7x
    weight_bytes = (2 * C * SE + SE + C) * 4
    io_alias = {0: 0} if donate_input else {}

    # ---------------- fused path: one (C, S) slab per grid step --------------
    buf_factor = 4                                # (in + out) x double buffering
    single_buffer = False
    if N == 1 and 4 * S * C * itemsize + 2 * weight_bytes + (2 << 20) > fused_budget:
        # one-step grid: double buffering gives zero overlap, only footprint
        single_buffer = True
        buf_factor = 2
    fused_need = buf_factor * S * C * itemsize + 2 * weight_bytes + (2 << 20)

    if not force_two_pass and fused_need <= fused_budget:
        x_buf = dict(pipeline_mode=pl.Buffered(1)) if single_buffer else {}
        x_in_spec = pl.BlockSpec((pl.Squeezed(), C, S), lambda n: (n, 0, 0), **x_buf)
        x_out_spec = pl.BlockSpec((pl.Squeezed(), C, S), lambda n: (n, 0, 0), **x_buf)
        out_t = pl.pallas_call(
            functools.partial(_se_fused_kernel, inv_s=1.0 / S),
            out_shape=jax.ShapeDtypeStruct((N, C, S), x.dtype),
            grid_spec=pltpu.PrefetchScalarGridSpec(
                num_scalar_prefetch=0,
                grid=(N,),
                in_specs=[
                    x_in_spec,
                    pl.BlockSpec((C, SE), lambda n: (0, 0)),
                    pl.BlockSpec((1, SE), lambda n: (0, 0)),
                    pl.BlockSpec((C, SE), lambda n: (0, 0)),
                    pl.BlockSpec((C, 1), lambda n: (0, 0)),
                ],
                out_specs=x_out_spec,
            ),
            compiler_params=pltpu.CompilerParams(
                dimension_semantics=("parallel",),
                vmem_limit_bytes=int(min(max(fused_need, 32 << 20) + (4 << 20),
                                         vmem_cap * 0.9)),
            ),
            input_output_aliases=io_alias,
        )(xt, w1t, b1r, w2f, b2r)
        return out_t.reshape(N, C, D, H, W)

    # ---------------- two-pass path: S-tiled reduce, XLA MLP, S-tiled rescale
    reduce_budget = int(vmem_cap * 0.30)          # pass-1 footprint ~ 2x tile
    scale_budget = int(vmem_cap * 0.40)           # pass-2 footprint ~ 4x tile
    tS_r = _pick_tile_s(S, C, itemsize, reduce_budget, buf_factor=2,
                        max_tile_s=max_tile_s)
    tS_s = _pick_tile_s(S, C, itemsize, scale_budget, buf_factor=4,
                        max_tile_s=max_tile_s)
    nT_r = pl.cdiv(S, tS_r)
    nT_s = pl.cdiv(S, tS_s)

    # core-parallel split of S for small batches (v7x: 2 TensorCores per chip)
    n_split = 2 if (N == 1 and nT_r >= 2 and nT_r % 2 == 0) else 1
    ns_per_split = nT_r // n_split

    need_r = 2 * tS_r * C * itemsize + (2 << 20)
    need_s = 4 * tS_s * C * itemsize + (2 << 20)
    vmem_limit = int(min(max(need_r, need_s, 32 << 20) + (4 << 20), vmem_cap * 0.9))

    # pass 1: raw per-(batch, split) channel sums
    partial = pl.pallas_call(
        functools.partial(_se_sum_kernel, s_total=S, tile_s=tS_r,
                          masked=(S % tS_r != 0)),
        out_shape=jax.ShapeDtypeStruct((N, n_split, C, 1), jnp.float32),
        grid_spec=pltpu.PrefetchScalarGridSpec(
            num_scalar_prefetch=0,
            grid=(N, n_split, ns_per_split),
            in_specs=[pl.BlockSpec(
                (pl.Squeezed(), C, tS_r),
                lambda n, p, si: (n, 0, p * ns_per_split + si))],
            out_specs=pl.BlockSpec(
                (pl.Squeezed(), pl.Squeezed(), C, 1),
                lambda n, p, si: (n, p, 0, 0)),
        ),
        compiler_params=pltpu.CompilerParams(
            dimension_semantics=("parallel", "parallel", "arbitrary"),
            vmem_limit_bytes=vmem_limit,
        ),
    )(xt)

    # squeeze MLP hoisted to plain XLA: only N*C numbers
    mean = jnp.sum(partial[..., 0], axis=1) * (1.0 / S)        # (N, C) f32
    h = mean @ w1t + b1r                                        # (N, SE)
    h = h * jax.nn.sigmoid(h)                                   # SiLU
    s = h @ jnp.transpose(w2f) + b2r[:, 0][None, :]             # (N, C)
    s_scale = jax.nn.sigmoid(s)[:, :, None]                     # (N, C, 1) f32

    # pass 2: elementwise rescale
    out_t = pl.pallas_call(
        _se_scale_kernel,
        out_shape=jax.ShapeDtypeStruct((N, C, S), x.dtype),
        grid_spec=pltpu.PrefetchScalarGridSpec(
            num_scalar_prefetch=0,
            grid=(N, nT_s),
            in_specs=[
                pl.BlockSpec((pl.Squeezed(), C, tS_s), lambda n, si: (n, 0, si)),
                pl.BlockSpec((pl.Squeezed(), C, 1), lambda n, si: (n, 0, 0)),
            ],
            out_specs=pl.BlockSpec((pl.Squeezed(), C, tS_s),
                                   lambda n, si: (n, 0, si)),
        ),
        compiler_params=pltpu.CompilerParams(
            dimension_semantics=("parallel", "parallel"),
            vmem_limit_bytes=vmem_limit,
        ),
        input_output_aliases=io_alias,
    )(xt, s_scale)

    return out_t.reshape(N, C, D, H, W)


# ---------------------------------------------------------------------------
# reference + test
# ---------------------------------------------------------------------------

def _reference(x, w1, b1, w2, b2):
    avg = jnp.mean(x, axis=(2, 3, 4), keepdims=True)                  # (N,C,1,1,1)
    h = jnp.einsum('oc,ncdhw->nodhw', w1, avg) + b1[None, :, None, None, None]
    h = h * jax.nn.sigmoid(h)                                         # SiLU
    s = jnp.einsum('oc,ncdhw->nodhw', w2, h) + b2[None, :, None, None, None]
    s = jax.nn.sigmoid(s)
    return s * x


if __name__ == "__main__":
    key = jax.random.PRNGKey(0)
    k_x, k_w1, k_b1, k_w2, k_b2 = jax.random.split(key, 5)

    # Small shape: C=128 channels, 8^3 volume -> S=512 (lane-dense S tiles).
    N, C, D, H, W = 2, 128, 8, 8, 8
    SE = int(C * 0.25)   # se_ratio = 0.25 -> 32

    x = jax.random.normal(k_x, (N, C, D, H, W), dtype=jnp.float32)
    w1 = 0.1 * jax.random.normal(k_w1, (SE, C), dtype=jnp.float32)
    b1 = 0.1 * jax.random.normal(k_b1, (SE,), dtype=jnp.float32)
    w2 = 0.1 * jax.random.normal(k_w2, (C, SE), dtype=jnp.float32)
    b2 = 0.1 * jax.random.normal(k_b2, (C,), dtype=jnp.float32)

    ref = _reference(x, w1, b1, w2, b2)

    # fused path: single read + single write of x, no wrapper transposes
    out_fused = jax.block_until_ready(squeeze_excite(x, w1, b1, w2, b2))
    assert out_fused.shape == (N, C, D, H, W)
    assert jnp.allclose(out_fused, ref, atol=1e-5, rtol=1e-5), "fused mismatch"

    # two-pass fallback, forced with small S tiles so the accumulating
    # reduction grid (multiple si steps) is exercised.
    out_2p = jax.block_until_ready(
        squeeze_excite(x, w1, b1, w2, b2, force_two_pass=True, max_tile_s=128))
    assert jnp.allclose(out_2p, ref, atol=1e-5, rtol=1e-5), "two-pass mismatch"

    # N == 1: exercises the core-parallel S split (grid (N, 2, nS/2)) of the
    # reduce pass that keeps both v7x TensorCores busy for small batches.
    x1 = x[:1]
    ref1 = _reference(x1, w1, b1, w2, b2)
    out1 = jax.block_until_ready(
        squeeze_excite(x1, w1, b1, w2, b2, force_two_pass=True, max_tile_s=128))
    assert jnp.allclose(out1, ref1, atol=1e-5, rtol=1e-5), "split mismatch"

    print("KERNEL_OK")
</pallas_src>

<mosaic_0001>
module attributes {stable_mosaic.version = 11 : i64} {
  func.func @_se_fused_kernel(%arg0: i32, %arg1: memref<1x128x512xf32, #tpu.memory_space<vmem>>, %arg2: memref<128x32xf32, #tpu.memory_space<vmem>>, %arg3: memref<1x32xf32, #tpu.memory_space<vmem>>, %arg4: memref<128x32xf32, #tpu.memory_space<vmem>>, %arg5: memref<128x1xf32, #tpu.memory_space<vmem>>, %arg6: memref<1x128x512xf32, #tpu.memory_space<vmem>>) attributes {dimension_semantics = [#tpu.dimension_semantics<parallel>], iteration_bounds = array<i64: 2>, scalar_prefetch = 0 : i64, scratch_operands = 0 : i64, tpu.core_type = #tpu.core_type<tc>, window_params = [{transform_indices = @transform_0, window_bounds = array<i64: 1, 128, 512>}, {pipeline_mode = #tpu.pipeline_mode<synchronous>, transform_indices = @transform_1, window_bounds = array<i64: 128, 32>}, {pipeline_mode = #tpu.pipeline_mode<synchronous>, transform_indices = @transform_2, window_bounds = array<i64: 1, 32>}, {pipeline_mode = #tpu.pipeline_mode<synchronous>, transform_indices = @transform_3, window_bounds = array<i64: 128, 32>}, {pipeline_mode = #tpu.pipeline_mode<synchronous>, transform_indices = @transform_4, window_bounds = array<i64: 128, 1>}, {transform_indices = @transform_5, window_bounds = array<i64: 1, 128, 512>}]} {
    %c0 = arith.constant 0 : index
    %c0_0 = arith.constant 0 : index
    %c0_1 = arith.constant 0 : index
    %0 = vector.load %arg1[%c0, %c0_0, %c0_1] : memref<1x128x512xf32, #tpu.memory_space<vmem>>, vector<1x128x512xf32>
    %1 = vector.shape_cast %0 : vector<1x128x512xf32> to vector<128x512xf32>
    %cst = arith.constant dense<0.000000e+00> : vector<128xf32>
    %2 = vector.multi_reduction <add>, %1, %cst [1] : vector<128x512xf32> to vector<128xf32>
    %3 = vector.shape_cast %2 : vector<128xf32> to vector<128x1xf32>
    %cst_2 = arith.constant 0.001953125 : f32
    %4 = vector.broadcast %cst_2 : f32 to vector<128x1xf32>
    %5 = arith.mulf %3, %4 : vector<128x1xf32>
    %c0_3 = arith.constant 0 : index
    %c0_4 = arith.constant 0 : index
    %6 = vector.load %arg2[%c0_3, %c0_4] : memref<128x32xf32, #tpu.memory_space<vmem>>, vector<128x32xf32>
    %7 = vector.broadcast %5 : vector<128x1xf32> to vector<128x32xf32>
    %8 = arith.mulf %6, %7 : vector<128x32xf32>
    %cst_5 = arith.constant dense<0.000000e+00> : vector<32xf32>
    %9 = vector.multi_reduction <add>, %8, %cst_5 [0] : vector<128x32xf32> to vector<32xf32>
    %10 = vector.shape_cast %9 : vector<32xf32> to vector<1x32xf32>
    %c0_6 = arith.constant 0 : index
    %c0_7 = arith.constant 0 : index
    %11 = vector.load %arg3[%c0_6, %c0_7] : memref<1x32xf32, #tpu.memory_space<vmem>>, vector<1x32xf32>
    %12 = arith.addf %10, %11 : vector<1x32xf32>
    %cst_8 = arith.constant 0.000000e+00 : f32
    %13 = vector.broadcast %cst_8 : f32 to vector<1x32xf32>
    %14 = arith.subf %13, %12 : vector<1x32xf32>
    %15 = math.exp %14 : vector<1x32xf32>
    %cst_9 = arith.constant 1.000000e+00 : f32
    %16 = vector.broadcast %cst_9 : f32 to vector<1x32xf32>
    %17 = arith.addf %16, %15 : vector<1x32xf32>
    %cst_10 = arith.constant 1.000000e+00 : f32
    %18 = vector.broadcast %cst_10 : f32 to vector<1x32xf32>
    %19 = arith.divf %18, %17 : vector<1x32xf32>
    %20 = arith.mulf %12, %19 : vector<1x32xf32>
    %c0_11 = arith.constant 0 : index
    %c0_12 = arith.constant 0 : index
    %21 = vector.load %arg4[%c0_11, %c0_12] : memref<128x32xf32, #tpu.memory_space<vmem>>, vector<128x32xf32>
    %22 = vector.broadcast %20 : vector<1x32xf32> to vector<128x32xf32>
    %23 = arith.mulf %21, %22 : vector<128x32xf32>
    %cst_13 = arith.constant dense<0.000000e+00> : vector<128xf32>
    %24 = vector.multi_reduction <add>, %23, %cst_13 [1] : vector<128x32xf32> to vector<128xf32>
    %25 = vector.shape_cast %24 : vector<128xf32> to vector<128x1xf32>
    %c0_14 = arith.constant 0 : index
    %c0_15 = arith.constant 0 : index
    %26 = vector.load %arg5[%c0_14, %c0_15] : memref<128x1xf32, #tpu.memory_space<vmem>>, vector<128x1xf32>
    %27 = arith.addf %25, %26 : vector<128x1xf32>
    %cst_16 = arith.constant 0.000000e+00 : f32
    %28 = vector.broadcast %cst_16 : f32 to vector<128x1xf32>
    %29 = arith.subf %28, %27 : vector<128x1xf32>
    %30 = math.exp %29 : vector<128x1xf32>
    %cst_17 = arith.constant 1.000000e+00 : f32
    %31 = vector.broadcast %cst_17 : f32 to vector<128x1xf32>
    %32 = arith.addf %31, %30 : vector<128x1xf32>
    %cst_18 = arith.constant 1.000000e+00 : f32
    %33 = vector.broadcast %cst_18 : f32 to vector<128x1xf32>
    %34 = arith.divf %33, %32 : vector<128x1xf32>
    %35 = vector.broadcast %34 : vector<128x1xf32> to vector<128x512xf32>
    %36 = arith.mulf %1, %35 : vector<128x512xf32>
    %c0_19 = arith.constant 0 : index
    %c0_20 = arith.constant 0 : index
    %c0_21 = arith.constant 0 : index
    %37 = vector.load %arg6[%c0_19, %c0_20, %c0_21] : memref<1x128x512xf32, #tpu.memory_space<vmem>>, vector<1x128x512xf32>
    %38 = vector.shape_cast %37 : vector<1x128x512xf32> to vector<128x512xf32>
    %39 = vector.shape_cast %36 : vector<128x512xf32> to vector<1x128x512xf32>
    tpu.vector_store %arg6[%c0_19, %c0_20, %c0_21], %39 {strides = array<i32>} : memref<1x128x512xf32, #tpu.memory_space<vmem>>, vector<1x128x512xf32>,
    return
  }
  func.func @transform_0(%arg0: i32) -> (i32, i32, i32) {
    %c0_i32 = arith.constant 0 : i32
    %c0_i32_0 = arith.constant 0 : i32
    %c0_i32_1 = arith.constant 0 : i32
    return %arg0, %c0_i32, %c0_i32_0 : i32, i32, i32
  }
  func.func @transform_1(%arg0: i32) -> (i32, i32) {
    %c0_i32 = arith.constant 0 : i32
    %c0_i32_0 = arith.constant 0 : i32
    %c0_i32_1 = arith.constant 0 : i32
    return %c0_i32, %c0_i32_0 : i32, i32
  }
  func.func @transform_2(%arg0: i32) -> (i32, i32) {
    %c0_i32 = arith.constant 0 : i32
    %c0_i32_0 = arith.constant 0 : i32
    %c0_i32_1 = arith.constant 0 : i32
    return %c0_i32, %c0_i32_0 : i32, i32
  }
  func.func @transform_3(%arg0: i32) -> (i32, i32) {
    %c0_i32 = arith.constant 0 : i32
    %c0_i32_0 = arith.constant 0 : i32
    %c0_i32_1 = arith.constant 0 : i32
    return %c0_i32, %c0_i32_0 : i32, i32
  }
  func.func @transform_4(%arg0: i32) -> (i32, i32) {
    %c0_i32 = arith.constant 0 : i32
    %c0_i32_0 = arith.constant 0 : i32
    %c0_i32_1 = arith.constant 0 : i32
    return %c0_i32, %c0_i32_0 : i32, i32
  }
  func.func @transform_5(%arg0: i32) -> (i32, i32, i32) {
    %c0_i32 = arith.constant 0 : i32
    %c0_i32_0 = arith.constant 0 : i32
    %c0_i32_1 = arith.constant 0 : i32
    return %arg0, %c0_i32, %c0_i32_0 : i32, i32, i32
  }
}

</mosaic_0001>

<bundles_post_ra>
// kernel: tpu_custom_call.1
= control target key start
LH: loop header
LB: loop body
LE: loop exit
PB: predicated region body
PF: predicated region fallthrough
CT: control target
= control target key end

     0   :  { %10 = vsyncpa [#allocation3], 0  ;;  %s1951_s0 = inlined_call_operand.hbm [shape: f32[2,128,512], index: 0, kind: input, shape index: {}]   ;;  %s1952_s1 = inlined_call_operand.vmem [shape: f32[128,32], index: 1, kind: input, shape index: {}]   ;;  %s1953_s2 = inlined_call_operand.vmem [shape: f32[1,32], index: 2, kind: input, shape index: {}]   ;;  %s1954_s3 = inlined_call_operand.vmem [shape: f32[128,32], index: 3, kind: input, shape index: {}]   ;;  %s1955_s4 = inlined_call_operand.vmem [shape: f32[128,1], index: 4, kind: input, shape index: {}]   ;;  %s1956_s5 = inlined_call_operand.hbm [shape: f32[2,128,512], index: 5, kind: output, shape index: {}]  }
   0x1   :  { %12 = vsyncpa [#allocation3 + $0x1], 0 }
   0x2   :  { %13 = vsyncpa [#allocation4], 0 }
   0x3   :  { %15 = vsyncpa [#allocation4 + $0x1], 0  ;;  %s1283_s18 = smov 0   ;;  %s1285_s19 = smov 0  }
   0x4   :  { %s1287_s20 = smov 0   ;;  %s1289_s21 = smov 0  }
   0x5 LB: > { %s1304_s22 = sadd.s32 4294967295, %s1244_s21   ;;  %s989_s23 = sadd.s32 4294967294, %s1244_s21   ;;  %s1244_s21 = sphi %s1289_s21, %s1975_s21   ;;  %s1240_s20 = sphi %s1287_s20, %s1974_s20   ;;  %s1236_s19 = sphi %s1285_s19, %s1973_s19   ;;  %s1232_s18 = sphi %s1283_s18, %s1972_s18  }
   0x6   : > { %s1308_s24 = sadd.s32 1, %s1244_s21   ;;  %s28_s25 = sadd.s32 1, %s1240_s20 }
   0x7   : > { %s25_s26 = ssub.s32 %s1244_s21, %s1308_s24  ;;  %p35_p0 = scmp.ne.s32.totalorder %s1240_s20, %s1236_s19 }
   0x8   : > { %p26_p1 = scmp.eq.s32.totalorder %s25_s26, 0  ;;  %p36_p2 = scmp.eq.s32.totalorder %s1244_s21, 0 }
   0x9   : > { %p41_p3 = scmp.ne.s32.totalorder %s1236_s19, %s1232_s18  ;;  %p42_p4 = scmp.eq.s32.totalorder %s1304_s22, 0 }
   0xa   : > { %s1320_s27 = scalar_select %p26_p1, %s1240_s20, %s28_s25  }
   0xb   : > { %p1322_p5 = por %p36_p2, %p35_p0  ;;  %p1326_p6 = por %p42_p4, %p41_p3 }
   0xc   : > { %p149_p7 = scmp.eq.s32.totalorder %s1304_s22, 1  ;;  %p155_p8 = scmp.eq.s32.totalorder %s989_s23, 1 }
   0xd   : > { %p1017_p10 = scmp.lt.s32.totalorder %s1244_s21, 2  ;;  %s187_s7 = sand.u32 1, %s1240_s20  }
   0xe   : > { %p1333_p11 = por %p149_p7, %p35_p0  ;;  %p1337_p12 = por %p155_p8, %p41_p3 }
   0xf   : > { %s1003_s8 = sshll.u32 %s1244_s21, 13  ;;  %s992_s9 = sshll.u32 %s187_s7, 9 }
  0x10   : > { %s1962_s30 = scalar_select %p1333_p11, 1, 0 }
  0x11   : > { %s1963_s6 = scalar_select %p1337_p12, 1, 0 }
  0x12   : > { %s1346_s12 = scalar_lea.hbm %s1951_s0, %s1003_s8  ;;  %s191_s13 = scalar_lea.vmem [#allocation2], %s992_s9 }
  0x13   : > { %s198_s14 = sshll.u32 %s191_s13, 4  ;;  %p1350_p13 = pnand %p1017_p10, %p1322_p5  ;;  %s1354_s14 = int_to_ptr.vmem [resolvable:$true] %s198_s14 }
  0x14   : > { %s1356_s16 = scalar_lea.sflag [#allocation3], %s187_s7  ;;  %s1148_s17 = scalar_lea.hbm %s1346_s12, 8192 }
  0x15   : > { %p1149_p0 = scmp.ne.s32.totalorder %s1346_s12, %s1148_s17  ;;  %p1150_p1 = pneg %p1350_p13 }
  0x16   : > { %s1153_s26 = scalar_lea.hbm %s1951_s0, 16384  ;;  %p1154_p4 = scmp.lt.u32.totalorder %s1346_s12, %s1951_s0 }
  0x17   : > { %p1151_p2 = pnand %p1150_p1, %p1149_p0  ;;  %p1155_p5 = scmp.lt.u32.totalorder %s1153_s26, %s1148_s17 }
  0x18   : > { %p1157_p8 = scmp.lt.u32.totalorder %s1148_s17, %s1346_s12 }
  0x19   : > { %p1152_p3 = pneg %p1151_p2  ;;  %p1156_p7 = por %p1155_p5, %p1154_p4 }
  0x1b   : > { %p1158_p10 = por %p1157_p8, %p1156_p7 }
  0x1d   : > { %p1159_p9 = pnand %p1158_p10, %p1152_p3 }
  0x1f   : > { %1162 = shalt.err (!%p1159_p9)
}
  0x20   : > { %s1163_s7 = scalar_lea.vmem %s1354_s14, 8192  ;;  %s1246_s9 = smov [#allocation2]  }
  0x21   : > { %p1164_p0 = scmp.ne.s32.totalorder %s1354_s14, %s1163_s7  ;;  %s1168_s10 = sshll.u32 %s1246_s9, 4  ;;  %s1169_s10 = int_to_ptr.vmem [resolvable:$false] %s1168_s10 }
  0x22   : > { %s1170_s11 = scalar_lea.vmem %s1169_s10, 16384  ;;  %p1171_p11 = scmp.lt.s32.totalorder %s1354_s14, %s1169_s10 }
  0x23   : > { %p1166_p2 = pnand %p1164_p0, %p1150_p1  ;;  %p1172_p4 = scmp.lt.s32.totalorder %s1170_s11, %s1163_s7 }
  0x25   : > { %p1167_p12 = pneg %p1166_p2  ;;  %p1173_p5 = por %p1172_p4, %p1171_p11 }
  0x27   : > { %p1174_p7 = pnand %p1173_p5, %p1167_p12 }
  0x29   : > { %1177 = shalt.err (!%p1174_p7)
}
  0x2a   : > { %s1247_s13 = smov 512   ;;  %s1248_s17 = smov 32  }
  0x2b   : > { %1012 = dma.hbm_to_vmem [thread:$0]  (!%p1350_p13), %s1346_s12, 8192, %s1354_s14, %s1356_s16, %s1247_s13, %s1247_s13, %s1248_s17  }
  0x2c   : > { %p995_p9 = scmp.ge.s32.totalorder %s1244_s21, 1  ;;  %p206_p1 = scmp.lt.s32.totalorder %s1244_s21, 3 }
  0x2e   : > { %p207_p3 = pnand %p995_p9, %p206_p1 }
  0x30   : > { %210 = sbr.rel (%p207_p3) target bundleno = 655 (0x28f), region = 40 }
  0x37   : > { %s1387_s23 = sand.u32 1, %s1236_s19  }
  0x38   : > { %s996_s25 = sshll.u32 %s1387_s23, 9  ;;  %s213_s26 = scalar_lea.sflag [#allocation3], %s1387_s23 }
  0x39   : > { %s1393_s28 = scalar_lea.vmem [#allocation2], %s996_s25 }
  0x3a   : > { %1223 = dma.done.wait (%p1326_p6), %s213_s26, 8192  }
  0x3b   : > { %1225 = vsyncadd (%p1326_p6), %s213_s26, 4294959104  ;;  %v1400_v0 = vld [vmem:[%s1393_s28] sm:$0xff]  ;;  %v1403_v1 = vld [vmem:[%s1393_s28 + $0x8] sm:$0xff]  ;;  %vm435_vm0 = vcmask 261120   ;;  %s1778_s9 = scalar_lea.vmem [#allocation5], %s996_s25  ;;  %s1004_s25 = sshll.u32 %s1304_s22, 13 }
  0x3c   : > { %v1406_v2 = vld [vmem:[%s1393_s28 + $0x10] sm:$0xff]  ;;  %v307_v3 = vadd.f32 %v1403_v1, %v1400_v0  ;;  %v1411_v4 = vld [vmem:[%s1393_s28 + $0x40] sm:$0xff]  ;;  %v1414_v5 = vld [vmem:[%s1393_s28 + $0x48] sm:$0xff]  ;;  %s916_s10 = sshll.u32 %s1778_s9, 4  ;;  %s1897_s17 = scalar_lea.hbm %s1956_s5, %s1004_s25  ;;  %s1899_s10 = int_to_ptr.vmem [resolvable:$true] %s916_s10 }
  0x3d   : > { %v1417_v6 = vld [vmem:[%s1393_s28 + $0x18] sm:$0xff]  ;;  %v1420_v7 = vld [vmem:[%s1393_s28 + $0x50] sm:$0xff]  ;;  %v317_v8 = vadd.f32 %v1414_v5, %v1411_v4  ;;  %v1425_v9 = vld [vmem:[%s1393_s28 + $0x20] sm:$0xff]  ;;  %s903_s22 = scalar_lea.sflag [#allocation4], %s1387_s23  ;;  %s1178_s26 = scalar_lea.vmem %s1899_s10, 8192 }
  0x3e   : > { %v308_v10 = vadd.f32 %v307_v3, %v1406_v2  ;;  %v1429_v11 = vld [vmem:[%s1393_s28 + $0x58] sm:$0xff]  ;;  %v1432_v12 = vld [vmem:[%s1393_s28 + $0x28] sm:$0xff]  ;;  %v1435_v13 = vld [vmem:[%s1393_s28 + $0x30] sm:$0xff]  ;;  %p1179_p6 = scmp.ne.s32.totalorder %s1899_s10, %s1178_s26  ;;  %p1969_p11 = scmp.ne.s32.totalorder %s1962_s30, 0 }
  0x3f   : > { %v318_v14 = vadd.f32 %v317_v8, %v1420_v7  ;;  %v312_v15 = vadd.f32 %v1432_v12, %v1425_v9  ;;  %v1441_v16 = vld [vmem:[%s1393_s28 + $0x60] sm:$0xff]  ;;  %v1444_v17 = vld [vmem:[%s1393_s28 + $0x68] sm:$0xff]  ;;  %v1447_v18 = vld [vmem:[%s1393_s28 + $0x70] sm:$0xff]  ;;  %s1250_s29 = smov [#allocation5]  }
  0x40   : > { %v309_v19 = vadd.f32 %v308_v10, %v1417_v6  ;;  %v1451_v20 = vld [vmem:[%s1393_s28 + $0x38] sm:$0xff]  ;;  %v322_v21 = vadd.f32 %v1444_v17, %v1441_v16  ;;  %v1456_v22 = vld [vmem:[%s1393_s28 + $0x80] sm:$0xff]  ;;  %v1459_v23 = vld [vmem:[%s1393_s28 + $0x88] sm:$0xff]  ;;  %p1180_p12 = pnand %p1179_p6, %p1969_p11  ;;  %s1182_s12 = sshll.u32 %s1250_s29, 4  ;;  %s1183_s12 = int_to_ptr.vmem [resolvable:$false] %s1182_s12 }
  0x41   : > { %v319_v24 = vadd.f32 %v318_v14, %v1429_v11  ;;  %v313_v25 = vadd.f32 %v312_v15, %v1435_v13  ;;  %v1464_v26 = vld [vmem:[%s1393_s28 + $0x78] sm:$0xff]  ;;  %v1467_v27 = vld [vmem:[%s1393_s28 + $0x90] sm:$0xff]  ;;  %v327_v28 = vadd.f32 %v1459_v23, %v1456_v22  ;;  %v1472_v29 = vld [vmem:[%s1393_s28 + $0xa0] sm:$0xff]  ;;  %s1184_s14 = scalar_lea.vmem %s1183_s12, 16384  ;;  %p1185_p8 = scmp.lt.s32.totalorder %s1899_s10, %s1183_s12 }
  0x42   : > { %310 = vadd.xlane.f32.xlu0 %v309_v19  ;;  %v323_v30 = vadd.f32 %v322_v21, %v1447_v18  ;;  %v1476_v31 = vld [vmem:[%s1393_s28 + $0x98] sm:$0xff]  ;;  %v1479_v32 = vld [vmem:[%s1393_s28 + $0xa8] sm:$0xff]  ;;  %v1482_v33 = vld [vmem:[%s1393_s28 + $0xb0] sm:$0xff]  ;;  %p1181_p13 = pneg %p1180_p12  ;;  %p1186_p10 = scmp.lt.s32.totalorder %s1184_s14, %s1178_s26 }
  0x43   : > { %320 = vadd.xlane.f32.xlu1 %v319_v24  ;;  %v314_v34 = vadd.f32 %v313_v25, %v1451_v20  ;;  %v328_v35 = vadd.f32 %v327_v28, %v1467_v27  ;;  %v332_v36 = vadd.f32 %v1479_v32, %v1472_v29  ;;  %v267_v37 = vld [vmem:[%s1393_s28 + $0xc0] sm:$0xff]  ;;  %v268_v38 = vld [vmem:[%s1393_s28 + $0xc8] sm:$0xff]  ;;  %v269_v39 = vld [vmem:[%s1393_s28 + $0xd0] sm:$0xff] }
  0x44   : > { %v324_v40 = vadd.f32 %v323_v30, %v1464_v26  ;;  %v1493_v41 = vld [vmem:[%s1393_s28 + $0xb8] sm:$0xff]  ;;  %v337_v42 = vadd.f32 %v268_v38, %v267_v37  ;;  %v271_v43 = vld [vmem:[%s1393_s28 + $0xe0] sm:$0xff]  ;;  %v272_v44 = vld [vmem:[%s1393_s28 + $0xe8] sm:$0xff]  ;;  %p1187_p0 = por %p1186_p10, %p1185_p8 }
  0x45   : > { %v333_v45 = vadd.f32 %v332_v36, %v1482_v33  ;;  %v273_v46 = vld [vmem:[%s1393_s28 + $0xf0] sm:$0xff]  ;;  %v342_v47 = vadd.f32 %v272_v44, %v271_v43  ;;  %v275_v48 = vld [vmem:[%s1393_s28 + $0x100] sm:$0xff]  ;;  %v329_v49 = vadd.f32 %v328_v35, %v1476_v31  ;;  %v1502_v50 = vld [vmem:[%s1393_s28 + $0xd8] sm:$0xff] }
  0x46   : > { %315 = vadd.xlane.f32.xlu0 %v314_v34  ;;  %v338_v51 = vadd.f32 %v337_v42, %v269_v39  ;;  %v274_v52 = vld [vmem:[%s1393_s28 + $0xf8] sm:$0xff]  ;;  %v276_v53 = vld [vmem:[%s1393_s28 + $0x108] sm:$0xff]  ;;  %v277_v56 = vld [vmem:[%s1393_s28 + $0x110] sm:$0xff]  ;;  %p1188_p2 = pnand %p1187_p0, %p1181_p13 }
  0x47   : > { %325 = vadd.xlane.f32.xlu1 %v324_v40  ;;  %v334_v54 = vadd.f32 %v333_v45, %v1493_v41  ;;  %v343_v55 = vadd.f32 %v342_v47, %v273_v46  ;;  %v347_v57 = vadd.f32 %v276_v53, %v275_v48  ;;  %v1509_v58 = vld [vmem:[%s1393_s28 + $0x120] sm:$0xff]  ;;  %v1512_v59 = vld [vmem:[%s1393_s28 + $0x128] sm:$0xff]  ;;  %v1515_v60 = vld [vmem:[%s1393_s28 + $0x130] sm:$0xff] }
  0x48   : > { %v352_v61 = vadd.f32 %v1512_v59, %v1509_v58  ;;  %v283_v62 = vld [vmem:[%s1393_s28 + $0x140] sm:$0xff]  ;;  %v284_v63 = vld [vmem:[%s1393_s28 + $0x148] sm:$0xff]  ;;  %v339_v8 = vadd.f32 %v338_v51, %v1502_v50  ;;  %v278_v10 = vld [vmem:[%s1393_s28 + $0x118] sm:$0xff] }
  0x49   : > { %v1522_v3 = vld [vmem:[%s1393_s28 + $0x160] sm:$0xff]  ;;  %v348_v14 = vadd.f32 %v347_v57, %v277_v56  ;;  %v1527_v15 = vld [vmem:[%s1393_s28 + $0x138] sm:$0xff]  ;;  %v357_v19 = vadd.f32 %v284_v63, %v283_v62  ;;  %v1530_v21 = vld [vmem:[%s1393_s28 + $0x168] sm:$0xff]  ;;  %v344_v24 = vadd.f32 %v343_v55, %v274_v52 }
  0x4a   : > { %330 = vadd.xlane.f32.xlu0 %v329_v49  ;;  %v353_v25 = vadd.f32 %v352_v61, %v1515_v60  ;;  %v285_v28 = vld [vmem:[%s1393_s28 + $0x150] sm:$0xff]  ;;  %v362_v30 = vadd.f32 %v1530_v21, %v1522_v3  ;;  %v291_v34 = vld [vmem:[%s1393_s28 + $0x180] sm:$0xff]  ;;  %v292_v35 = vld [vmem:[%s1393_s28 + $0x188] sm:$0xff] }
  0x4b   : > { %335 = vadd.xlane.f32.xlu1 %v334_v54  ;;  %v1539_v36 = vld [vmem:[%s1393_s28 + $0x170] sm:$0xff]  ;;  %v1542_v37 = vld [vmem:[%s1393_s28 + $0x1a0] sm:$0xff]  ;;  %v1545_v38 = vld [vmem:[%s1393_s28 + $0x1a8] sm:$0xff]  ;;  %v349_v39 = vadd.f32 %v348_v14, %v278_v10  ;;  %v358_v42 = vadd.f32 %v357_v19, %v285_v28  ;;  %v367_v44 = vadd.f32 %v292_v35, %v291_v34 }
  0x4c   : > { %v286_v40 = vld [vmem:[%s1393_s28 + $0x158] sm:$0xff]  ;;  %v354_v45 = vadd.f32 %v353_v25, %v1527_v15  ;;  %v363_v46 = vadd.f32 %v362_v30, %v1539_v36  ;;  %v293_v47 = vld [vmem:[%s1393_s28 + $0x190] sm:$0xff]  ;;  %v372_v48 = vadd.f32 %v1545_v38, %v1542_v37  ;;  %v299_v49 = vld [vmem:[%s1393_s28 + $0x1c0] sm:$0xff] }
  0x4d   : > { %v1549_v43 = vld [vmem:[%s1393_s28 + $0x178] sm:$0xff]  ;;  %v300_v51 = vld [vmem:[%s1393_s28 + $0x1c8] sm:$0xff]  ;;  %v1559_v52 = vld [vmem:[%s1393_s28 + $0x1b0] sm:$0xff]  ;;  %v359_v55 = vadd.f32 %v358_v42, %v286_v40  ;;  %v368_v56 = vadd.f32 %v367_v44, %v293_v47 }
  0x4e   : > { %340 = vadd.xlane.f32.xlu0 %v339_v8  ;;  %v1562_v53 = vld [vmem:[%s1393_s28 + $0x1e0] sm:$0xff]  ;;  %v1565_v54 = vld [vmem:[%s1393_s28 + $0x1e8] sm:$0xff]  ;;  %v377_v57 = vadd.f32 %v300_v51, %v299_v49  ;;  %v364_v61 = vadd.f32 %v363_v46, %v1549_v43  ;;  %v1569_v62 = vld [vmem:[%s1393_s28 + $0x198] sm:$0xff]  ;;  %v373_v63 = vadd.f32 %v372_v48, %v1559_v52 }
  0x4f   : > { %345 = vadd.xlane.f32.xlu1 %v344_v24  ;;  %1965 = vst [vmem:[#allocation8_spill] sm:$0xff] %v1569_v62  ;;  %v301_v8 = vld [vmem:[%s1393_s28 + $0x1d0] sm:$0xff]  ;;  %v382_v10 = vadd.f32 %v1565_v54, %v1562_v53  ;;  %v1576_v14 = vld [vmem:[%s1393_s28 + $0x1b8] sm:$0xff]  ;;  %v369_v24 = vadd.f32 %v368_v56, %v1569_v62  ;;  %v403_v46 = vld [vmem:[%s1952_s1] sm:$0xff] }
  0x50   : > { %v1579_v19 = vld [vmem:[%s1393_s28 + $0x1f0] sm:$0xff]  ;;  %v378_v25 = vadd.f32 %v377_v57, %v301_v8  ;;  %v374_v28 = vadd.f32 %v373_v63, %v1576_v14  ;;  %v302_v30 = vld [vmem:[%s1393_s28 + $0x1d8] sm:$0xff]  ;;  %v404_v49 = vld [vmem:[%s1952_s1 + $0x8] sm:$0xff] }
  0x51   : > { %v383_v34 = vadd.f32 %v382_v10, %v1579_v19  ;;  %v1586_v35 = vld [vmem:[%s1393_s28 + $0x1f8] sm:$0xff]  ;;  %v405_v48 = vld [vmem:[%s1952_s1 + $0x10] sm:$0xff] }
  0x52   : > { %350 = vadd.xlane.f32.xlu0 %v349_v39  ;;  %1966 = vst [vmem:[#allocation9_spill] sm:$0xff] %v1586_v35  ;;  %v379_v39 = vadd.f32 %v378_v25, %v302_v30  ;;  %v406_v57 = vld [vmem:[%s1952_s1 + $0x18] sm:$0xff]  ;;  %v407_v25 = vld [vmem:[%s1952_s1 + $0x20] sm:$0xff] }
  0x53   : > { %355 = vadd.xlane.f32.xlu1 %v354_v45  ;;  %v384_v40 = vadd.f32 %v383_v34, %v1586_v35 }
  0x56   : > { %360 = vadd.xlane.f32.xlu0 %v359_v55 }
  0x57   : > { %365 = vadd.xlane.f32.xlu1 %v364_v61 }
  0x5a   : > { %370 = vadd.xlane.f32.xlu0 %v369_v24 }
  0x5b   : > { %375 = vadd.xlane.f32.xlu1 %v374_v28 }
  0x5e   : > { %380 = vadd.xlane.f32.xlu0 %v379_v39 }
  0x5f   : > { %385 = vadd.xlane.f32.xlu1 %v384_v40  ;;  %v408_v40 = vld [vmem:[%s1952_s1 + $0x28] sm:$0xff] }
  0xcf   : > { %v311_v42 = vpop.xlane.xlu0 %310 }
  0xd0   : > { %v387_v44 = vmul.f32 0.001953125, %v311_v42  ;;  %v321_v45 = vpop.xlane.xlu1 %320 }
  0xd1   : > { %v389_v47 = vmul.f32 0.001953125, %v321_v45 }
  0xd2   : > { %v419_v55 = vmul.f32 %v403_v46, %v387_v44 }
  0xd3   : > { %v316_v51 = vpop.xlane.xlu0 %315  ;;  %v421_v8 = vmul.f32 %v405_v48, %v389_v47 }
  0xd4   : > { %v388_v56 = vmul.f32 0.001953125, %v316_v51  ;;  %v326_v61 = vpop.xlane.xlu1 %325  ;;  %v436_v30 = vsel %vm435_vm0, %v419_v55, 0.0  ;;  %v409_v55 = vld [vmem:[%s1952_s1 + $0x30] sm:$0xff] }
  0xd5   : > { %v390_v63 = vmul.f32 0.001953125, %v326_v61  ;;  %v439_v46 = vsel %vm435_vm0, %v421_v8, 0.0 }
  0xd6   : > { %v420_v10 = vmul.f32 %v404_v49, %v388_v56 }
  0xd7   : > { %v422_v24 = vmul.f32 %v406_v57, %v390_v63  ;;  %v331_v28 = vpop.xlane.xlu0 %330  ;;  %v410_v63 = vld [vmem:[%s1952_s1 + $0x38] sm:$0xff] }
  0xd8   : > { %v437_v34 = vsel %vm435_vm0, %v420_v10, 0.0  ;;  %v391_v39 = vmul.f32 0.001953125, %v331_v28  ;;  %v336_v42 = vpop.xlane.xlu1 %335 }
  0xd9   : > { %v438_v44 = vadd.f32 %v437_v34, %v436_v30  ;;  %v392_v45 = vmul.f32 0.001953125, %v336_v42  ;;  %v441_v47 = vsel %vm435_vm0, %v422_v24, 0.0 }
  0xda   : > { %v423_v48 = vmul.f32 %v407_v25, %v391_v39  ;;  %v411_v39 = vld [vmem:[%s1952_s1 + $0x40] sm:$0xff] }
  0xdb   : > { %v440_v49 = vadd.f32 %v439_v46, %v438_v44  ;;  %v424_v51 = vmul.f32 %v408_v40, %v392_v45  ;;  %v341_v56 = vpop.xlane.xlu0 %340  ;;  %v412_v45 = vld [vmem:[%s1952_s1 + $0x48] sm:$0xff] }
  0xdc   : > { %v443_v57 = vsel %vm435_vm0, %v423_v48, 0.0  ;;  %v393_v61 = vmul.f32 0.001953125, %v341_v56  ;;  %v346_v10 = vpop.xlane.xlu1 %345 }
  0xdd   : > { %v442_v28 = vadd.f32 %v441_v47, %v440_v49  ;;  %v394_v8 = vmul.f32 0.001953125, %v346_v10  ;;  %v445_v24 = vsel %vm435_vm0, %v424_v51, 0.0 }
  0xde   : > { %v425_v25 = vmul.f32 %v409_v55, %v393_v61 }
  0xdf   : > { %v444_v30 = vadd.f32 %v443_v57, %v442_v28  ;;  %v426_v34 = vmul.f32 %v410_v63, %v394_v8  ;;  %v351_v40 = vpop.xlane.xlu0 %350  ;;  %v413_v57 = vld [vmem:[%s1952_s1 + $0x50] sm:$0xff]  ;;  %v414_v28 = vld [vmem:[%s1952_s1 + $0x58] sm:$0xff] }
  0xe0   : > { %v447_v42 = vsel %vm435_vm0, %v425_v25, 0.0  ;;  %v395_v44 = vmul.f32 0.001953125, %v351_v40  ;;  %v356_v46 = vpop.xlane.xlu1 %355 }
  0xe1   : > { %v446_v47 = vadd.f32 %v445_v24, %v444_v30  ;;  %v396_v48 = vmul.f32 0.001953125, %v356_v46  ;;  %v449_v49 = vsel %vm435_vm0, %v426_v34, 0.0 }
  0xe2   : > { %v427_v51 = vmul.f32 %v411_v39, %v395_v44 }
  0xe3   : > { %v448_v55 = vadd.f32 %v447_v42, %v446_v47  ;;  %v428_v56 = vmul.f32 %v412_v45, %v396_v48  ;;  %v361_v61 = vpop.xlane.xlu0 %360  ;;  %v415_v42 = vld [vmem:[%s1952_s1 + $0x60] sm:$0xff]  ;;  %v416_v47 = vld [vmem:[%s1952_s1 + $0x68] sm:$0xff] }
  0xe4   : > { %v451_v63 = vsel %vm435_vm0, %v427_v51, 0.0  ;;  %v397_v10 = vmul.f32 0.001953125, %v361_v61  ;;  %v366_v8 = vpop.xlane.xlu1 %365 }
  0xe5   : > { %v450_v24 = vadd.f32 %v449_v49, %v448_v55  ;;  %v398_v25 = vmul.f32 0.001953125, %v366_v8  ;;  %v453_v30 = vsel %vm435_vm0, %v428_v56, 0.0 }
  0xe6   : > { %v429_v34 = vmul.f32 %v413_v57, %v397_v10 }
  0xe7   : > { %v452_v39 = vadd.f32 %v451_v63, %v450_v24  ;;  %v430_v40 = vmul.f32 %v414_v28, %v398_v25  ;;  %v371_v44 = vpop.xlane.xlu0 %370  ;;  %v417_v63 = vld [vmem:[%s1952_s1 + $0x70] sm:$0xff]  ;;  %v418_v24 = vld [vmem:[%s1952_s1 + $0x78] sm:$0xff] }
  0xe8   : > { %v455_v45 = vsel %vm435_vm0, %v429_v34, 0.0  ;;  %v399_v46 = vmul.f32 0.001953125, %v371_v44  ;;  %v376_v48 = vpop.xlane.xlu1 %375 }
  0xe9   : > { %v454_v49 = vadd.f32 %v453_v30, %v452_v39  ;;  %v400_v51 = vmul.f32 0.001953125, %v376_v48  ;;  %v457_v55 = vsel %vm435_vm0, %v430_v40, 0.0 }
  0xea   : > { %v431_v56 = vmul.f32 %v415_v42, %v399_v46 }
  0xeb   : > { %v456_v57 = vadd.f32 %v455_v45, %v454_v49  ;;  %v432_v61 = vmul.f32 %v416_v47, %v400_v51  ;;  %v381_v10 = vpop.xlane.xlu0 %380 }
  0xec   : > { %v459_v28 = vsel %vm435_vm0, %v431_v56, 0.0  ;;  %v401_v8 = vmul.f32 0.001953125, %v381_v10  ;;  %v386_v25 = vpop.xlane.xlu1 %385 }
  0xed   : > { %v458_v30 = vadd.f32 %v457_v55, %v456_v57  ;;  %v402_v34 = vmul.f32 0.001953125, %v386_v25  ;;  %v461_v39 = vsel %vm435_vm0, %v432_v61, 0.0  ;;  %v473_v55 = vld [vmem:[%s1953_s2] sm:$0x1]  ;;  %v498_v25 = vlaneseq }
  0xee   : > { %v433_v40 = vmul.f32 %v417_v63, %v401_v8 }
  0xef   : > { %v460_v42 = vadd.f32 %v459_v28, %v458_v30  ;;  %v434_v44 = vmul.f32 %v418_v24, %v402_v34  ;;  %v499_v30 = vshrl.u32 %v498_v25, 7 }
  0xf0   : > { %v463_v45 = vsel %vm435_vm0, %v433_v40, 0.0 }
  0xf1   : > { %v462_v46 = vadd.f32 %v461_v39, %v460_v42  ;;  %v465_v47 = vsel %vm435_vm0, %v434_v44, 0.0  ;;  %v500_v34 = vsub.s32 0, %v499_v30  ;;  %v483_v42 = vld [vmem:[%s1954_s3 + $0x8] sm:$0xff]  ;;  %v485_v44 = vld [vmem:[%s1954_s3 + $0x18] sm:$0xff] }
  0xf3   : > { %v464_v48 = vadd.f32 %v463_v45, %v462_v46  ;;  %v484_v45 = vld [vmem:[%s1954_s3 + $0x10] sm:$0xff] }
  0xf5   : > { %v466_v49 = vadd.f32 %v465_v47, %v464_v48 }
  0xf7   : > { %v467_v51 = vrot.slane %v466_v49, 4 }
  0xf9   : > { %v468_v56 = vadd.f32 %v467_v51, %v466_v49 }
  0xfb   : > { %v469_v10 = vrot.slane %v468_v56, 2 }
  0xfd   : > { %v470_v62 = vadd.f32 %v469_v10, %v468_v56  ;;  %v487_v10 = vld [vmem:[%s1954_s3 + $0x28] sm:$0xff] }
  0xff   : > { %v471_v35 = vrot.slane %v470_v62, 1 }
 0x101   : > { %v472_v57 = vadd.f32 %v471_v35, %v470_v62  ;;  %v482_v62 = vld [vmem:[%s1954_s3] sm:$0xff] }
 0x103   : > { %v474_v61 = vadd.f32 %v473_v55, %v472_v57  ;;  %v486_v55 = vld [vmem:[%s1954_s3 + $0x20] sm:$0xff] }
 0x105   : > { %v475_v63 = vsub.f32 0.0, %v474_v61 }
 0x107   : > { %v476_v28 = vmul.f32 1.442695, %v475_v63 }
 0x109   : > { %1058 = vpow2.f32 %v476_v28 }
 0x113   : > { %v1059_v8 = vpop.eup %1058 }
 0x114   : > { %v478_v24 = vadd.f32 1.0, %v1059_v8  ;;  %v489_v8 = vld [vmem:[%s1954_s3 + $0x38] sm:$0xff] }
 0x116   : > { %1060 = vrcp.f32 %v478_v24  ;;  %v488_v24 = vld [vmem:[%s1954_s3 + $0x30] sm:$0xff] }
 0x120   : > { %v1061_v39 = vpop.eup %1060 }
 0x121   : > { %v481_v40 = vmul.f32 %v1061_v39, %v474_v61 }
 0x123   : > { %v501_v35 = vrot.slane %v481_v40, %v500_v34  ;;  %v491_v40 = vld [vmem:[%s1954_s3 + $0x48] sm:$0xff] }
 0x125   : > { %v503_v46 = vmul.f32 %v501_v35, %v483_v42  ;;  %v502_v47 = vmul.f32 %v501_v35, %v482_v62  ;;  %v505_v51 = vmul.f32 %v501_v35, %v485_v44  ;;  %v504_v56 = vmul.f32 %v501_v35, %v484_v45  ;;  %v490_v42 = vld [vmem:[%s1954_s3 + $0x40] sm:$0xff] }
 0x126   : > { %v507_v63 = vmul.f32 %v501_v35, %v487_v10  ;;  %v506_v28 = vmul.f32 %v501_v35, %v486_v55  ;;  %v509_v34 = vmul.f32 %v501_v35, %v489_v8  ;;  %v508_v39 = vmul.f32 %v501_v35, %v488_v24  ;;  %v495_v55 = vld [vmem:[%s1954_s3 + $0x68] sm:$0xff]  ;;  %v497_v24 = vld [vmem:[%s1954_s3 + $0x78] sm:$0xff] }
 0x127   : > { %v521_v48 = vsel %vm435_vm0, %v503_v46, 0.0  ;;  %v518_v49 = vsel %vm435_vm0, %v502_v47, 0.0  ;;  %v527_v57 = vsel %vm435_vm0, %v505_v51, 0.0  ;;  %v524_v61 = vsel %vm435_vm0, %v504_v56, 0.0  ;;  %v493_v47 = vld [vmem:[%s1954_s3 + $0x58] sm:$0xff] }
 0x128   : > { %522 = vadd.xlane.f32.xlu1 %v521_v48  ;;  %519 = vadd.xlane.f32.xlu0 %v518_v49  ;;  %v533_v25 = vsel %vm435_vm0, %v507_v63, 0.0  ;;  %v530_v30 = vsel %vm435_vm0, %v506_v28, 0.0  ;;  %v539_v62 = vsel %vm435_vm0, %v509_v34, 0.0  ;;  %v536_v44 = vsel %vm435_vm0, %v508_v39, 0.0  ;;  %v492_v48 = vld [vmem:[%s1954_s3 + $0x50] sm:$0xff] }
 0x129   : > { %v511_v45 = vmul.f32 %v501_v35, %v491_v40  ;;  %v510_v46 = vmul.f32 %v501_v35, %v490_v42  ;;  %v513_v56 = vmul.f32 %v501_v35, %v493_v47  ;;  %v512_v10 = vmul.f32 %v501_v35, %v492_v48 }
 0x12a   : > { %v515_v28 = vmul.f32 %v501_v35, %v495_v55  ;;  %v517_v39 = vmul.f32 %v501_v35, %v497_v24 }
 0x12b   : > { %v545_v49 = vsel %vm435_vm0, %v511_v45, 0.0  ;;  %v542_v51 = vsel %vm435_vm0, %v510_v46, 0.0  ;;  %v548_v63 = vsel %vm435_vm0, %v512_v10, 0.0  ;;  %v567_v45 = vld [vmem:[%s1955_s4 + $0x8] sm:$0xff]  ;;  %v566_v46 = vld [vmem:[%s1955_s4] sm:$0xff] }
 0x12c   : > { %528 = vadd.xlane.f32.xlu1 %v527_v57  ;;  %525 = vadd.xlane.f32.xlu0 %v524_v61  ;;  %v494_v57 = vld [vmem:[%s1954_s3 + $0x60] sm:$0xff]  ;;  %v551_v61 = vsel %vm435_vm0, %v513_v56, 0.0  ;;  %v563_v42 = vsel %vm435_vm0, %v517_v39, 0.0  ;;  %v568_v56 = vld [vmem:[%s1955_s4 + $0x10] sm:$0xff] }
 0x12d   : > { %v514_v8 = vmul.f32 %v501_v35, %v494_v57 }
 0x12f   : > { %v554_v34 = vsel %vm435_vm0, %v514_v8, 0.0 }
 0x130   : > { %534 = vadd.xlane.f32.xlu1 %v533_v25  ;;  %531 = vadd.xlane.f32.xlu0 %v530_v30  ;;  %v496_v25 = vld [vmem:[%s1954_s3 + $0x70] sm:$0xff]  ;;  %v557_v30 = vsel %vm435_vm0, %v515_v28, 0.0 }
 0x131   : > { %v516_v40 = vmul.f32 %v501_v35, %v496_v25  ;;  %v571_v25 = vld [vmem:[%s1955_s4 + $0x28] sm:$0xff] }
 0x134   : > { %540 = vadd.xlane.f32.xlu1 %v539_v62  ;;  %537 = vadd.xlane.f32.xlu0 %v536_v44  ;;  %v560_v62 = vsel %vm435_vm0, %v516_v40, 0.0  ;;  %v1249_v44 = vmov 0  }
 0x135   : > { %1057 = vset.pattern.permute.xlu1 %v1249_v44  ;;  %1056 = vset.pattern.permute.xlu0 %v1249_v44 }
 0x138   : > { %546 = vadd.xlane.f32.xlu1 %v545_v49  ;;  %543 = vadd.xlane.f32.xlu0 %v542_v51  ;;  %v569_v51 = vld [vmem:[%s1955_s4 + $0x18] sm:$0xff] }
 0x13c   : > { %552 = vadd.xlane.f32.xlu1 %v551_v61  ;;  %549 = vadd.xlane.f32.xlu0 %v548_v63 }
 0x140   : > { %558 = vadd.xlane.f32.xlu1 %v557_v30  ;;  %555 = vadd.xlane.f32.xlu0 %v554_v34  ;;  %v570_v30 = vld [vmem:[%s1955_s4 + $0x20] sm:$0xff] }
 0x144   : > { %564 = vadd.xlane.f32.xlu1 %v563_v42  ;;  %561 = vadd.xlane.f32.xlu0 %v560_v62 }
 0x1b5   : > { %v523_v35 = vpop.xlane.xlu1 %522  ;;  %v520_v47 = vpop.xlane.xlu0 %519 }
 0x1b6   : > { %v583_v48 = vadd.f32 %v567_v45, %v523_v35  ;;  %v582_v49 = vadd.f32 %v566_v46, %v520_v47  ;;  %v572_v35 = vld [vmem:[%s1955_s4 + $0x30] sm:$0xff] }
 0x1b8   : > { %v599_v10 = vsub.f32 0.0, %v583_v48  ;;  %v598_v55 = vsub.f32 0.0, %v582_v49 }
 0x1b9   : > { %v529_v57 = vpop.xlane.xlu1 %528  ;;  %v526_v61 = vpop.xlane.xlu0 %525 }
 0x1ba   : > { %v616_v63 = vmul.f32 1.442695, %v599_v10  ;;  %v614_v28 = vmul.f32 1.442695, %v598_v55  ;;  %v585_v8 = vadd.f32 %v569_v51, %v529_v57  ;;  %v584_v24 = vadd.f32 %v568_v56, %v526_v61  ;;  %v573_v55 = vld [vmem:[%s1955_s4 + $0x38] sm:$0xff]  ;;  %v575_v61 = vld [vmem:[%s1955_s4 + $0x48] sm:$0xff] }
 0x1bc   : > { %1062 = vpow2.f32 %v616_v63  ;;  %v601_v34 = vsub.f32 0.0, %v585_v8  ;;  %v600_v39 = vsub.f32 0.0, %v584_v24 }
 0x1bd   : > { %1064 = vpow2.f32 %v614_v28  ;;  %v535_v40 = vpop.xlane.xlu1 %534  ;;  %v532_v42 = vpop.xlane.xlu0 %531 }
 0x1be   : > { %v620_v62 = vmul.f32 1.442695, %v601_v34  ;;  %v618_v44 = vmul.f32 1.442695, %v600_v39  ;;  %v587_v45 = vadd.f32 %v571_v25, %v535_v40  ;;  %v586_v46 = vadd.f32 %v570_v30, %v532_v42  ;;  %v574_v34 = vld [vmem:[%s1955_s4 + $0x40] sm:$0xff]  ;;  %v577_v42 = vld [vmem:[%s1955_s4 + $0x58] sm:$0xff] }
 0x1c0   : > { %1066 = vpow2.f32 %v620_v62  ;;  %v603_v47 = vsub.f32 0.0, %v587_v45  ;;  %v602_v48 = vsub.f32 0.0, %v586_v46  ;;  %v576_v45 = vld [vmem:[%s1955_s4 + $0x50] sm:$0xff] }
 0x1c1   : > { %1068 = vpow2.f32 %v618_v44  ;;  %v541_v49 = vpop.xlane.xlu1 %540  ;;  %v538_v51 = vpop.xlane.xlu0 %537 }
 0x1c2   : > { %v624_v56 = vmul.f32 1.442695, %v603_v47  ;;  %v622_v10 = vmul.f32 1.442695, %v602_v48  ;;  %v588_v57 = vadd.f32 %v572_v35, %v538_v51  ;;  %v589_v63 = vadd.f32 %v573_v55, %v541_v49 }
 0x1c4   : > { %1070 = vpow2.f32 %v622_v10  ;;  %v604_v28 = vsub.f32 0.0, %v588_v57  ;;  %v605_v46 = vsub.f32 0.0, %v589_v63 }
 0x1c5   : > { %v547_v8 = vpop.xlane.xlu1 %546  ;;  %v544_v24 = vpop.xlane.xlu0 %543  ;;  %1072 = vpow2.f32 %v624_v56 }
 0x1c6   : > { %v1063_v25 = vpop.eup %1062  ;;  %v591_v30 = vadd.f32 %v575_v61, %v547_v8  ;;  %v626_v35 = vmul.f32 1.442695, %v604_v28  ;;  %v590_v47 = vadd.f32 %v574_v34, %v544_v24  ;;  %v579_v61 = vld [vmem:[%s1955_s4 + $0x68] sm:$0xff]  ;;  %v578_v24 = vld [vmem:[%s1955_s4 + $0x60] sm:$0xff] }
 0x1c7   : > { %v1065_v39 = vpop.eup %1064  ;;  %v647_v40 = vadd.f32 1.0, %v1063_v25 }
 0x1c8   : > { %v646_v62 = vadd.f32 1.0, %v1065_v39  ;;  %v607_v44 = vsub.f32 0.0, %v591_v30  ;;  %v628_v30 = vmul.f32 1.442695, %v605_v46  ;;  %v606_v63 = vsub.f32 0.0, %v590_v47 }
 0x1c9   : > { %1074 = vrcp.f32 %v647_v40  ;;  %v553_v48 = vpop.xlane.xlu1 %552  ;;  %v550_v49 = vpop.xlane.xlu0 %549 }
 0x1ca   : > { %v1067_v51 = vpop.eup %1066  ;;  %1076 = vrcp.f32 %v646_v62  ;;  %v632_v56 = vmul.f32 1.442695, %v607_v44  ;;  %v593_v10 = vadd.f32 %v577_v42, %v553_v48  ;;  %v592_v57 = vadd.f32 %v576_v45, %v550_v49  ;;  %v581_v45 = vld [vmem:[%s1955_s4 + $0x78] sm:$0xff] }
 0x1cb   : > { %v1069_v55 = vpop.eup %1068  ;;  %v649_v39 = vadd.f32 1.0, %v1067_v51  ;;  %v630_v47 = vmul.f32 1.442695, %v606_v63  ;;  %v580_v51 = vld [vmem:[%s1955_s4 + $0x70] sm:$0xff] }
 0x1cc   : > { %v648_v8 = vadd.f32 1.0, %v1069_v55  ;;  %1078 = vpow2.f32 %v632_v56  ;;  %v609_v25 = vsub.f32 0.0, %v593_v10  ;;  %v608_v44 = vsub.f32 0.0, %v592_v57 }
 0x1cd   : > { %1080 = vpow2.f32 %v626_v35  ;;  %v559_v28 = vpop.xlane.xlu1 %558  ;;  %v556_v34 = vpop.xlane.xlu0 %555 }
 0x1ce   : > { %1082 = vrcp.f32 %v648_v8  ;;  %v636_v40 = vmul.f32 1.442695, %v609_v25  ;;  %v595_v42 = vadd.f32 %v579_v61, %v559_v28  ;;  %v1071_v62 = vpop.eup %1070  ;;  %v594_v35 = vadd.f32 %v578_v24, %v556_v34 }
 0x1cf   : > { %v1073_v48 = vpop.eup %1072  ;;  %v650_v10 = vadd.f32 1.0, %v1071_v62  ;;  %v634_v25 = vmul.f32 1.442695, %v608_v44 }
 0x1d0   : > { %1084 = vpow2.f32 %v636_v40  ;;  %v611_v46 = vsub.f32 0.0, %v595_v42  ;;  %v651_v8 = vadd.f32 1.0, %v1073_v48  ;;  %v610_v40 = vsub.f32 0.0, %v594_v35 }
 0x1d1   : > { %1086 = vpow2.f32 %v628_v30  ;;  %v565_v49 = vpop.xlane.xlu1 %564  ;;  %v562_v56 = vpop.xlane.xlu0 %561 }
 0x1d2   : > { %1088 = vrcp.f32 %v649_v39  ;;  %v640_v55 = vmul.f32 1.442695, %v611_v46  ;;  %v597_v57 = vadd.f32 %v581_v45, %v565_v49  ;;  %v596_v24 = vadd.f32 %v580_v51, %v562_v56 }
 0x1d3   : > { %v1075_v61 = vpop.eup %1074  ;;  %v638_v45 = vmul.f32 1.442695, %v610_v40 }
 0x1d4   : > { %v1077_v28 = vpop.eup %1076  ;;  %1090 = vpow2.f32 %v640_v55  ;;  %v613_v42 = vsub.f32 0.0, %v597_v57  ;;  %701 = vperm.xlu1 %1057, %v1075_v61   ;;  %v612_v46 = vsub.f32 0.0, %v596_v24 }
 0x1d5   : > { %1092 = vpow2.f32 %v630_v47  ;;  %696 = vperm.xlu0 %1056, %v1077_v28  }
 0x1d6   : > { %v1079_v30 = vpop.eup %1078  ;;  %1094 = vrcp.f32 %v650_v10  ;;  %v644_v63 = vmul.f32 1.442695, %v613_v42  ;;  %v642_v47 = vmul.f32 1.442695, %v612_v46 }
 0x1d7   : > { %v1081_v34 = vpop.eup %1080  ;;  %1096 = vrcp.f32 %v651_v8  ;;  %v655_v39 = vadd.f32 1.0, %v1079_v30 }
 0x1d8   : > { %v1083_v62 = vpop.eup %1082  ;;  %1098 = vpow2.f32 %v634_v25  ;;  %v652_v48 = vadd.f32 1.0, %v1081_v34 }
 0x1d9   : > { %1100 = vrcp.f32 %v655_v39  ;;  %706 = vperm.xlu1 %1057, %v1083_v62  }
 0x1da   : > { %v1085_v44 = vpop.eup %1084  ;;  %1102 = vpow2.f32 %v644_v63 }
 0x1db   : > { %v1087_v35 = vpop.eup %1086  ;;  %v657_v49 = vadd.f32 1.0, %v1085_v44  ;;  %1104 = vpow2.f32 %v638_v45 }
 0x1dc   : > { %v1089_v51 = vpop.eup %1088  ;;  %v653_v10 = vadd.f32 1.0, %v1087_v35 }
 0x1dd   : > { %1106 = vrcp.f32 %v657_v49  ;;  %711 = vperm.xlu1 %1057, %v1089_v51  }
 0x1de   : > { %v1091_v56 = vpop.eup %1090  ;;  %1108 = vrcp.f32 %v652_v48 }
 0x1df   : > { %v1093_v55 = vpop.eup %1092  ;;  %v659_v57 = vadd.f32 1.0, %v1091_v56  ;;  %1110 = vpow2.f32 %v642_v47 }
 0x1e0   : > { %v1095_v61 = vpop.eup %1094  ;;  %v654_v28 = vadd.f32 1.0, %v1093_v55 }
 0x1e1   : > { %v1097_v8 = vpop.eup %1096  ;;  %1112 = vrcp.f32 %v659_v57  ;;  %716 = vperm.xlu1 %1057, %v1095_v61  }
 0x1e2   : > { %v1099_v25 = vpop.eup %1098  ;;  %1114 = vrcp.f32 %v653_v10 }
 0x1e3   : > { %v1101_v40 = vpop.eup %1100  ;;  %1116 = vrcp.f32 %v654_v28  ;;  %v656_v63 = vadd.f32 1.0, %v1099_v25 }
 0x1e4   : > { %v1103_v42 = vpop.eup %1102  ;;  %741 = vperm.xlu0 %1056, %v1101_v40  }
 0x1e5   : > { %v661_v24 = vadd.f32 1.0, %v1103_v42  ;;  %721 = vperm.xlu1 %1057, %v1097_v8   ;;  %v1105_v30 = vpop.eup %1104 }
 0x1e6   : > { %v658_v45 = vadd.f32 1.0, %v1105_v30 }
 0x1e7   : > { %v1107_v34 = vpop.eup %1106  ;;  %1118 = vrcp.f32 %v661_v24 }
 0x1e8   : > { %v1109_v39 = vpop.eup %1108  ;;  %751 = vperm.xlu0 %1056, %v1107_v34   ;;  %1120 = vrcp.f32 %v656_v63 }
 0x1e9   : > { %726 = vperm.xlu1 %1057, %v1109_v39   ;;  %v1111_v62 = vpop.eup %1110  ;;  %1122 = vrcp.f32 %v658_v45  ;;  %v1127_v45 = vld [vmem:[%s1393_s28 + $0xc8] sm:$0xff] }
 0x1ea   : > { %v660_v48 = vadd.f32 1.0, %v1111_v62 }
 0x1eb   : > { %v1113_v46 = vpop.eup %1112 }
 0x1ec   : > { %v1115_v44 = vpop.eup %1114  ;;  %761 = vperm.xlu0 %1056, %v1113_v46   ;;  %1124 = vrcp.f32 %v660_v48 }
 0x1ed   : > { %731 = vperm.xlu1 %1057, %v1115_v44   ;;  %v1117_v35 = vpop.eup %1116  ;;  %v1128_v44 = vld [vmem:[%s1393_s28 + $0xd0] sm:$0xff] }
 0x1f1   : > { %v1119_v49 = vpop.eup %1118  ;;  %736 = vperm.xlu1 %1057, %v1117_v35  }
 0x1f2   : > { %771 = vperm.xlu0 %1056, %v1119_v49   ;;  %v1121_v51 = vpop.eup %1120 }
 0x1f3   : > { %v1123_v47 = vpop.eup %1122 }
 0x1f5   : > { %746 = vperm.xlu1 %1057, %v1121_v51   ;;  %v1129_v51 = vld [vmem:[%s1393_s28 + $0xe0] sm:$0xff] }
 0x1f6   : > { %v1125_v56 = vpop.eup %1124 }
 0x1f9   : > { %756 = vperm.xlu1 %1057, %v1123_v47  }
 0x1fd   : > { %766 = vperm.xlu1 %1057, %v1125_v56   ;;  %v1130_v56 = vld [vmem:[%s1393_s28 + $0xe8] sm:$0xff] }
 0x253   : > { %v702_v10 = vpop.permute.xlu1 %701 }
 0x254   : > { %v778_v55 = vmul.f32 %v702_v10, %v1425_v9  ;;  %v779_v57 = vmul.f32 %v702_v10, %v1432_v12  ;;  %v780_v61 = vmul.f32 %v702_v10, %v1435_v13  ;;  %v781_v8 = vmul.f32 %v702_v10, %v1451_v20  ;;  %v697_v25 = vpop.permute.xlu0 %696 }
 0x255   : > { %v774_v28 = vmul.f32 %v697_v25, %v1400_v0  ;;  %v775_v40 = vmul.f32 %v697_v25, %v1403_v1  ;;  %v776_v42 = vmul.f32 %v697_v25, %v1406_v2  ;;  %v777_v24 = vmul.f32 %v697_v25, %v1417_v6 }
 0x256   : > { %842 = vst [vmem:[%s1778_s9 + $0x20] sm:$0xff] %v778_v55  ;;  %843 = vst [vmem:[%s1778_s9 + $0x28] sm:$0xff] %v779_v57  ;;  %v1131_v55 = vld [vmem:[%s1393_s28 + $0xf0] sm:$0xff] }
 0x257   : > { %844 = vst [vmem:[%s1778_s9 + $0x30] sm:$0xff] %v780_v61  ;;  %845 = vst [vmem:[%s1778_s9 + $0x38] sm:$0xff] %v781_v8  ;;  %v1134_v8 = vld [vmem:[%s1393_s28 + $0x108] sm:$0xff] }
 0x258   : > { %838 = vst [vmem:[%s1778_s9] sm:$0xff] %v774_v28  ;;  %839 = vst [vmem:[%s1778_s9 + $0x8] sm:$0xff] %v775_v40  ;;  %v707_v0 = vpop.permute.xlu1 %706  ;;  %v1135_v28 = vld [vmem:[%s1393_s28 + $0x110] sm:$0xff] }
 0x259   : > { %840 = vst [vmem:[%s1778_s9 + $0x10] sm:$0xff] %v776_v42  ;;  %841 = vst [vmem:[%s1778_s9 + $0x18] sm:$0xff] %v777_v24  ;;  %v782_v1 = vmul.f32 %v707_v0, %v1411_v4  ;;  %v783_v2 = vmul.f32 %v707_v0, %v1414_v5  ;;  %v784_v6 = vmul.f32 %v707_v0, %v1420_v7  ;;  %v1136_v42 = vld [vmem:[%s1393_s28 + $0x118] sm:$0xff] }
 0x25a   : > { %v785_v9 = vmul.f32 %v707_v0, %v1429_v11 }
 0x25b   : > { %846 = vst [vmem:[%s1778_s9 + $0x40] sm:$0xff] %v782_v1  ;;  %847 = vst [vmem:[%s1778_s9 + $0x48] sm:$0xff] %v783_v2 }
 0x25c   : > { %848 = vst [vmem:[%s1778_s9 + $0x50] sm:$0xff] %v784_v6  ;;  %849 = vst [vmem:[%s1778_s9 + $0x58] sm:$0xff] %v785_v9  ;;  %v712_v12 = vpop.permute.xlu1 %711  ;;  %v1967_v9 = vld [vmem:[#allocation9_spill] sm:$0xff] }
 0x25d   : > { %v786_v13 = vmul.f32 %v712_v12, %v1441_v16  ;;  %v787_v4 = vmul.f32 %v712_v12, %v1444_v17  ;;  %v788_v20 = vmul.f32 %v712_v12, %v1447_v18  ;;  %v789_v5 = vmul.f32 %v712_v12, %v1464_v26 }
 0x25f   : > { %850 = vst [vmem:[%s1778_s9 + $0x60] sm:$0xff] %v786_v13  ;;  %851 = vst [vmem:[%s1778_s9 + $0x68] sm:$0xff] %v787_v4  ;;  %v1138_v13 = vld [vmem:[%s1393_s28 + $0x148] sm:$0xff] }
 0x260   : > { %852 = vst [vmem:[%s1778_s9 + $0x70] sm:$0xff] %v788_v20  ;;  %853 = vst [vmem:[%s1778_s9 + $0x78] sm:$0xff] %v789_v5  ;;  %v717_v7 = vpop.permute.xlu1 %716  ;;  %v1139_v20 = vld [vmem:[%s1393_s28 + $0x150] sm:$0xff] }
 0x261   : > { %v790_v11 = vmul.f32 %v717_v7, %v1456_v22  ;;  %v791_v30 = vmul.f32 %v717_v7, %v1459_v23  ;;  %v792_v63 = vmul.f32 %v717_v7, %v1467_v27  ;;  %v793_v16 = vmul.f32 %v717_v7, %v1476_v31  ;;  %v1140_v7 = vld [vmem:[%s1393_s28 + $0x158] sm:$0xff] }
 0x263   : > { %854 = vst [vmem:[%s1778_s9 + $0x80] sm:$0xff] %v790_v11  ;;  %855 = vst [vmem:[%s1778_s9 + $0x88] sm:$0xff] %v791_v30  ;;  %v742_v17 = vpop.permute.xlu0 %741 }
 0x264   : > { %856 = vst [vmem:[%s1778_s9 + $0x90] sm:$0xff] %v792_v63  ;;  %857 = vst [vmem:[%s1778_s9 + $0x98] sm:$0xff] %v793_v16  ;;  %v722_v18 = vpop.permute.xlu1 %721  ;;  %v810_v22 = vmul.f32 %v742_v17, %v1509_v58  ;;  %v811_v23 = vmul.f32 %v742_v17, %v1512_v59  ;;  %v812_v26 = vmul.f32 %v742_v17, %v1515_v60  ;;  %v1126_v60 = vld [vmem:[%s1393_s28 + $0xc0] sm:$0xff] }
 0x265   : > { %v813_v27 = vmul.f32 %v742_v17, %v1527_v15  ;;  %v794_v31 = vmul.f32 %v722_v18, %v1472_v29  ;;  %v795_v34 = vmul.f32 %v722_v18, %v1479_v32  ;;  %v796_v39 = vmul.f32 %v722_v18, %v1482_v33  ;;  %v1141_v63 = vld [vmem:[%s1393_s28 + $0x180] sm:$0xff]  ;;  %v1142_v17 = vld [vmem:[%s1393_s28 + $0x188] sm:$0xff] }
 0x266   : > { %v797_v62 = vmul.f32 %v722_v18, %v1493_v41  ;;  %874 = vst [vmem:[%s1778_s9 + $0x120] sm:$0xff] %v810_v22  ;;  %875 = vst [vmem:[%s1778_s9 + $0x128] sm:$0xff] %v811_v23  ;;  %v1143_v22 = vld [vmem:[%s1393_s28 + $0x190] sm:$0xff] }
 0x267   : > { %876 = vst [vmem:[%s1778_s9 + $0x130] sm:$0xff] %v812_v26  ;;  %877 = vst [vmem:[%s1778_s9 + $0x138] sm:$0xff] %v813_v27  ;;  %v752_v29 = vpop.permute.xlu0 %751  ;;  %v1968_v26 = vld [vmem:[#allocation8_spill] sm:$0xff] }
 0x268   : > { %858 = vst [vmem:[%s1778_s9 + $0xa0] sm:$0xff] %v794_v31  ;;  %859 = vst [vmem:[%s1778_s9 + $0xa8] sm:$0xff] %v795_v34  ;;  %v727_v32 = vpop.permute.xlu1 %726  ;;  %v818_v33 = vmul.f32 %v752_v29, %v1522_v3  ;;  %v819_v41 = vmul.f32 %v752_v29, %v1530_v21  ;;  %v820_v58 = vmul.f32 %v752_v29, %v1539_v36  ;;  %v1144_v34 = vld [vmem:[%s1393_s28 + $0x1c0] sm:$0xff] }
 0x269   : > { %860 = vst [vmem:[%s1778_s9 + $0xb0] sm:$0xff] %v796_v39  ;;  %861 = vst [vmem:[%s1778_s9 + $0xb8] sm:$0xff] %v797_v62  ;;  %v821_v59 = vmul.f32 %v752_v29, %v1549_v43  ;;  %v798_v15 = vmul.f32 %v1126_v60, %v727_v32  ;;  %v799_v46 = vmul.f32 %v1127_v45, %v727_v32  ;;  %v1145_v62 = vld [vmem:[%s1393_s28 + $0x1c8] sm:$0xff] }
 0x26a   : > { %v800_v48 = vmul.f32 %v1128_v44, %v727_v32  ;;  %v801_v35 = vmul.f32 %v727_v32, %v1502_v50  ;;  %882 = vst [vmem:[%s1778_s9 + $0x160] sm:$0xff] %v818_v33  ;;  %883 = vst [vmem:[%s1778_s9 + $0x168] sm:$0xff] %v819_v41  ;;  %v1146_v32 = vld [vmem:[%s1393_s28 + $0x1d0] sm:$0xff]  ;;  %v1147_v41 = vld [vmem:[%s1393_s28 + $0x1d8] sm:$0xff] }
 0x26b   : > { %884 = vst [vmem:[%s1778_s9 + $0x170] sm:$0xff] %v820_v58  ;;  %885 = vst [vmem:[%s1778_s9 + $0x178] sm:$0xff] %v821_v59  ;;  %v762_v3 = vpop.permute.xlu0 %761 }
 0x26c   : > { %862 = vst [vmem:[%s1778_s9 + $0xc0] sm:$0xff] %v798_v15  ;;  %863 = vst [vmem:[%s1778_s9 + $0xc8] sm:$0xff] %v799_v46  ;;  %v732_v21 = vpop.permute.xlu1 %731  ;;  %v826_v36 = vmul.f32 %v762_v3, %v1542_v37  ;;  %v827_v50 = vmul.f32 %v762_v3, %v1545_v38  ;;  %v828_v43 = vmul.f32 %v762_v3, %v1559_v52  ;;  %v1132_v37 = vld [vmem:[%s1393_s28 + $0xf8] sm:$0xff]  ;;  %v1133_v52 = vld [vmem:[%s1393_s28 + $0x100] sm:$0xff] }
 0x26d   : > { %864 = vst [vmem:[%s1778_s9 + $0xd0] sm:$0xff] %v800_v48  ;;  %865 = vst [vmem:[%s1778_s9 + $0xd8] sm:$0xff] %v801_v35  ;;  %v829_v49 = vmul.f32 %v762_v3, %v1576_v14  ;;  %v802_v47 = vmul.f32 %v1129_v51, %v732_v21  ;;  %v803_v10 = vmul.f32 %v1130_v56, %v732_v21 }
 0x26e   : > { %v804_v57 = vmul.f32 %v1131_v55, %v732_v21  ;;  %v805_v61 = vmul.f32 %v1132_v37, %v732_v21  ;;  %890 = vst [vmem:[%s1778_s9 + $0x1a0] sm:$0xff] %v826_v36  ;;  %891 = vst [vmem:[%s1778_s9 + $0x1a8] sm:$0xff] %v827_v50 }
 0x26f   : > { %892 = vst [vmem:[%s1778_s9 + $0x1b0] sm:$0xff] %v828_v43  ;;  %893 = vst [vmem:[%s1778_s9 + $0x1b8] sm:$0xff] %v829_v49 }
 0x270   : > { %866 = vst [vmem:[%s1778_s9 + $0xe0] sm:$0xff] %v802_v47  ;;  %867 = vst [vmem:[%s1778_s9 + $0xe8] sm:$0xff] %v803_v10  ;;  %v737_v38 = vpop.permute.xlu1 %736 }
 0x271   : > { %868 = vst [vmem:[%s1778_s9 + $0xf0] sm:$0xff] %v804_v57  ;;  %869 = vst [vmem:[%s1778_s9 + $0xf8] sm:$0xff] %v805_v61  ;;  %v806_v14 = vmul.f32 %v1133_v52, %v737_v38  ;;  %v807_v25 = vmul.f32 %v1134_v8, %v737_v38  ;;  %v808_v40 = vmul.f32 %v1135_v28, %v737_v38  ;;  %v772_v0 = vpop.permute.xlu0 %771 }
 0x272   : > { %v809_v24 = vmul.f32 %v1136_v42, %v737_v38  ;;  %v834_v1 = vmul.f32 %v772_v0, %v1562_v53  ;;  %v835_v2 = vmul.f32 %v772_v0, %v1565_v54  ;;  %v836_v6 = vmul.f32 %v772_v0, %v1579_v19  ;;  %v1137_v54 = vld [vmem:[%s1393_s28 + $0x140] sm:$0xff] }
 0x273   : > { %v837_v12 = vmul.f32 %v772_v0, %v1967_v9  ;;  %870 = vst [vmem:[%s1778_s9 + $0x100] sm:$0xff] %v806_v14  ;;  %871 = vst [vmem:[%s1778_s9 + $0x108] sm:$0xff] %v807_v25 }
 0x274   : > { %872 = vst [vmem:[%s1778_s9 + $0x110] sm:$0xff] %v808_v40  ;;  %873 = vst [vmem:[%s1778_s9 + $0x118] sm:$0xff] %v809_v24  ;;  %v747_v53 = vpop.permute.xlu1 %746 }
 0x275   : > { %898 = vst [vmem:[%s1778_s9 + $0x1e0] sm:$0xff] %v834_v1  ;;  %899 = vst [vmem:[%s1778_s9 + $0x1e8] sm:$0xff] %v835_v2  ;;  %v814_v19 = vmul.f32 %v1137_v54, %v747_v53  ;;  %v815_v4 = vmul.f32 %v1138_v13, %v747_v53  ;;  %v816_v5 = vmul.f32 %v1139_v20, %v747_v53 }
 0x276   : > { %900 = vst [vmem:[%s1778_s9 + $0x1f0] sm:$0xff] %v836_v6  ;;  %901 = vst [vmem:[%s1778_s9 + $0x1f8] sm:$0xff] %v837_v12  ;;  %v817_v11 = vmul.f32 %v1140_v7, %v747_v53 }
 0x277   : > { %878 = vst [vmem:[%s1778_s9 + $0x140] sm:$0xff] %v814_v19  ;;  %879 = vst [vmem:[%s1778_s9 + $0x148] sm:$0xff] %v815_v4 }
 0x278   : > { %880 = vst [vmem:[%s1778_s9 + $0x150] sm:$0xff] %v816_v5  ;;  %881 = vst [vmem:[%s1778_s9 + $0x158] sm:$0xff] %v817_v11  ;;  %v757_v30 = vpop.permute.xlu1 %756 }
 0x279   : > { %v822_v16 = vmul.f32 %v1141_v63, %v757_v30  ;;  %v823_v18 = vmul.f32 %v1142_v17, %v757_v30  ;;  %v824_v23 = vmul.f32 %v1143_v22, %v757_v30  ;;  %v825_v27 = vmul.f32 %v757_v30, %v1968_v26 }
 0x27b   : > { %886 = vst [vmem:[%s1778_s9 + $0x180] sm:$0xff] %v822_v16  ;;  %887 = vst [vmem:[%s1778_s9 + $0x188] sm:$0xff] %v823_v18 }
 0x27c   : > { %888 = vst [vmem:[%s1778_s9 + $0x190] sm:$0xff] %v824_v23  ;;  %889 = vst [vmem:[%s1778_s9 + $0x198] sm:$0xff] %v825_v27  ;;  %v767_v31 = vpop.permute.xlu1 %766 }
 0x27d   : > { %v830_v39 = vmul.f32 %v1144_v34, %v767_v31  ;;  %v831_v29 = vmul.f32 %v1145_v62, %v767_v31  ;;  %v832_v33 = vmul.f32 %v1146_v32, %v767_v31  ;;  %v833_v58 = vmul.f32 %v1147_v41, %v767_v31 }
 0x27f   : > { %894 = vst [vmem:[%s1778_s9 + $0x1c0] sm:$0xff] %v830_v39  ;;  %895 = vst [vmem:[%s1778_s9 + $0x1c8] sm:$0xff] %v831_v29 }
 0x280   : > { %896 = vst [vmem:[%s1778_s9 + $0x1d0] sm:$0xff] %v832_v33  ;;  %897 = vst [vmem:[%s1778_s9 + $0x1d8] sm:$0xff] %v833_v58 }
 0x281   : > { %1191 = shalt.err (!%p1188_p2)
}
 0x282   : > { %s1192_s28 = scalar_lea.hbm %s1897_s17, 8192  ;;  %s1196_s8 = scalar_lea.hbm %s1956_s5, 16384 }
 0x283   : > { %p1193_p4 = scmp.ne.s32.totalorder %s1897_s17, %s1192_s28  ;;  %p1197_p9 = scmp.lt.u32.totalorder %s1897_s17, %s1956_s5 }
 0x284   : > { %p1198_p1 = scmp.lt.u32.totalorder %s1196_s8, %s1192_s28  ;;  %p1200_p6 = scmp.lt.u32.totalorder %s1192_s28, %s1897_s17 }
 0x285   : > { %p1194_p5 = pnand %p1193_p4, %p1969_p11 }
 0x286   : > { %p1199_p3 = por %p1198_p1, %p1197_p9 }
 0x287   : > { %p1195_p7 = pneg %p1194_p5 }
 0x288   : > { %p1201_p12 = por %p1200_p6, %p1199_p3 }
 0x28a   : > { %p1202_p13 = pnand %p1201_p12, %p1195_p7 }
 0x28c   : > { %1205 = shalt.err (!%p1202_p13)
}
 0x28d   : > { %s1251_s25 = smov 512   ;;  %s1252_s11 = smov 32  }
 0x28e   : > { %1007 = dma.vmem_to_hbm [thread:$0]  (%p1969_p11), %s1899_s10, 8192, %s1897_s17, %s903_s22, %s1251_s25, %s1251_s25, %s1252_s11  }
 0x28f PF: > { %s931_s13 = sand.u32 1, %s1232_s18   ;;  %p1970_p8 = scmp.ne.s32.totalorder %s1963_s6, 0 }
 0x290   : > { %p1971_p10 = scmp.ge.s32.totalorder %s1244_s21, 2  ;;  %s932_s26 = scalar_lea.sflag [#allocation4], %s931_s13 }
 0x292   : > { %p1014_p0 = pnand %p1971_p10, %p1970_p8 }
 0x294   : > { %1227 = dma.done.wait (!%p1014_p0), %s932_s26, 8192  }
 0x295   : > { %1229 = vsyncadd (!%p1014_p0), %s932_s26, 4294959104  ;;  %p18_p2 = scmp.ge.s32.totalorder %s1308_s24, 4   ;;  %s1972_s18 = smov %s1236_s19 }
 0x296   : > { %s1973_s19 = smov %s1240_s20  ;;  %s1974_s20 = smov %s1320_s27 }
 0x297   : > { %s1975_s21 = smov %s1308_s24  ;;  %20 = sbr.rel (!%p18_p2) target bundleno = 5 (0x5), region = 85 }
 0x29e   :  { %937 = vsyncpa [#allocation3], 1 }
 0x29f   :  { %939 = vsyncpa [#allocation3 + $0x1], 1 }
 0x2a0   :  { %940 = vsyncpa [#allocation4], 1 }
 0x2a1   :  { %942 = vsyncpa [#allocation4 + $0x1], 1 }

</bundles_post_ra>
